<compile_context>
chip_gen: v5e
topology: v5e:2x2
jax: 0.10.0
libtpu: 0.0.40
codegen_flags: <defaults>
</compile_context>

<pallas_src>
import jax
import jax.numpy as jnp
from jax.experimental import pallas as pl
from jax.experimental.pallas import tpu as pltpu

HIDDEN = 256
NOUT = 128          # lane-dense output width (q1 in col 0, q2 in col 1)


def _round_up(x, m):
    return (x + m - 1) // m * m


# --------------------------------------------------------------------------
# Kernel
# --------------------------------------------------------------------------
def _critic_kernel(s_ref, a_ref, w14s_ref, w14a_ref, b14_ref,
                   w25_ref, b25_ref, w36_ref, b36_ref, q_ref):
    # Layer 1: fused Q1|Q2 branches, f32 operands (tiny, unaligned K),
    # contraction split over the state and action operands.
    hg = (jnp.dot(s_ref[...], w14s_ref[...],
                  preferred_element_type=jnp.float32)
          + jnp.dot(a_ref[...], w14a_ref[...],
                    preferred_element_type=jnp.float32)
          + b14_ref[...])
    hg = jnp.maximum(hg, 0.0)                           # (tb, 512) f32

    h = hg[:, :HIDDEN].astype(jnp.bfloat16)             # Q1 activations
    g = hg[:, HIDDEN:].astype(jnp.bfloat16)             # Q2 activations

    # Layer 2: two 256x256 bf16 matmuls; per-branch bias + ReLU (no concat).
    h2 = jnp.maximum(
        jnp.dot(h, w25_ref[0], preferred_element_type=jnp.float32)
        + b25_ref[0], 0.0)                              # (tb, 256) f32
    g2 = jnp.maximum(
        jnp.dot(g, w25_ref[1], preferred_element_type=jnp.float32)
        + b25_ref[1], 0.0)                              # (tb, 256) f32

    # Layer 3: block-diagonal head, padded to 128 lanes -> unmasked store.
    q_ref[...] = (
        jnp.dot(h2.astype(jnp.bfloat16), w36_ref[0],
                preferred_element_type=jnp.float32)
        + jnp.dot(g2.astype(jnp.bfloat16), w36_ref[1],
                  preferred_element_type=jnp.float32)
        + b36_ref[...])                                 # (tb, 128) f32


# --------------------------------------------------------------------------
# Parameter packing (done once, outside the hot path)
# --------------------------------------------------------------------------
def prepare_critic_params(params, state_dim):
    """Pack the 12 PyTorch-style (transposed) Linear params into 7 fused,
    MXU-friendly operands.  Layer-1 weights stay f32; layer-2/3 are bf16."""
    (w1, b1, w2, b2, w3, b3, w4, b4, w5, b5, w6, b6) = params

    # Layer 1: Q1|Q2 fused along the output axis, split along the contraction
    # axis into (state rows, action rows) so the kernel can ingest state and
    # action directly (no wrapper concat).
    w14 = jnp.concatenate([w1, w4], axis=1)             # (K, 512) f32
    w14_s = w14[:state_dim]                             # (Sd, 512)
    w14_a = w14[state_dim:]                             # (Ad, 512)
    b14 = jnp.concatenate([b1, b4])[None, :]            # (1, 512) f32

    # Layer 2: stacked per-branch weights / biases.
    w25 = jnp.stack([w2, w5]).astype(jnp.bfloat16)      # (2, 256, 256) bf16
    b25 = jnp.stack([b2, b5])[:, None, :]               # (2, 1, 256) f32

    # Layer 3: block-diagonal head padded to 128 lane-dense output columns.
    w36 = jnp.zeros((2, HIDDEN, NOUT), jnp.float32)
    w36 = w36.at[0, :, 0:1].set(w3).at[1, :, 1:2].set(w6)
    b36 = jnp.zeros((1, NOUT), jnp.float32)
    b36 = b36.at[0, 0].set(b3[0]).at[0, 1].set(b6[0])

    return (w14_s, w14_a, b14, w25, b25, w36.astype(jnp.bfloat16), b36)


# --------------------------------------------------------------------------
# Forward wrapper
# --------------------------------------------------------------------------
@jax.jit
def critic_forward(state, action, packed):
    """Pallas implementation of Critic.forward(state, action) -> (q1, q2)."""
    w14_s, w14_a, b14, w25, b25, w36, b36 = packed
    B, Sd = state.shape
    Ad = action.shape[1]
    K = Sd + Ad

    # ---- batch tiling -----------------------------------------------------
    # 16-row alignment for bf16 sublane packing; fall back to 8 when that
    # avoids a wrapper pad launch (e.g. B=8).  Tile capped at 1024 rows
    # (VMEM footprint ~7 MiB, fine on every generation).
    align = 8 if (B % 16 != 0 and B % 8 == 0) else 16
    tb = min(_round_up(B, align), 1024)
    # v7x megacore: keep >= 2 parallel grid steps for large batches so both
    # TensorCores get work (per-step overhead ~0.35us is negligible there;
    # harmless on single-TC v5e/v6e).
    if B >= 128 and _round_up(B, tb) // tb < 2:
        tb = _round_up(pl.cdiv(B, 2), align)
    Bp = _round_up(B, tb)
    if Bp != B:
        state = jnp.pad(state, ((0, Bp - B), (0, 0)))
        action = jnp.pad(action, ((0, Bp - B), (0, 0)))

    grid = (Bp // tb,)
    in_specs = [
        pl.BlockSpec((tb, Sd), lambda i: (i, 0)),          # state: batch-tiled
        pl.BlockSpec((tb, Ad), lambda i: (i, 0)),          # action: batch-tiled
        pl.BlockSpec(w14_s.shape, lambda i: (0, 0)),       # weights pinned
        pl.BlockSpec(w14_a.shape, lambda i: (0, 0)),
        pl.BlockSpec(b14.shape, lambda i: (0, 0)),
        pl.BlockSpec(w25.shape, lambda i: (0, 0, 0)),
        pl.BlockSpec(b25.shape, lambda i: (0, 0, 0)),
        pl.BlockSpec(w36.shape, lambda i: (0, 0, 0)),
        pl.BlockSpec(b36.shape, lambda i: (0, 0)),
    ]
    out_specs = pl.BlockSpec((tb, NOUT), lambda i: (i, 0))

    flops = 2 * Bp * (K * 2 * HIDDEN + 2 * HIDDEN * HIDDEN + 2 * HIDDEN * NOUT)
    bytes_accessed = (
        4 * Bp * (K + NOUT)                                # activations in/out
        + 4 * (K * 2 * HIDDEN + 2 * HIDDEN + 2 * HIDDEN + NOUT)  # f32 params
        + 2 * (2 * HIDDEN * HIDDEN + 2 * HIDDEN * NOUT))   # bf16 params

    q = pl.pallas_call(
        _critic_kernel,
        out_shape=jax.ShapeDtypeStruct((Bp, NOUT), jnp.float32),
        grid=grid,
        in_specs=in_specs,
        out_specs=out_specs,
        compiler_params=pltpu.CompilerParams(
            dimension_semantics=("parallel",)),
        cost_estimate=pl.CostEstimate(
            flops=flops, transcendentals=0, bytes_accessed=bytes_accessed),
    )(state, action, w14_s, w14_a, b14, w25, b25, w36, b36)

    return q[:B, 0:1], q[:B, 1:2]


# --------------------------------------------------------------------------
# Param init + references
# --------------------------------------------------------------------------
def init_critic_params(key, state_dim, action_dim):
    """Matches nn.Linear default init U(-1/sqrt(fan_in), 1/sqrt(fan_in)).
    Weights stored already transposed: (in_features, out_features)."""
    dims = [
        (state_dim + action_dim, 256), (256, 256), (256, 1),   # Q1
        (state_dim + action_dim, 256), (256, 256), (256, 1),   # Q2
    ]
    params = []
    for (fan_in, fan_out) in dims:
        key, kw, kb = jax.random.split(key, 3)
        bound = 1.0 / jnp.sqrt(jnp.float32(fan_in))
        w = jax.random.uniform(kw, (fan_in, fan_out), jnp.float32, -bound, bound)
        b = jax.random.uniform(kb, (fan_out,), jnp.float32, -bound, bound)
        params.extend([w, b])
    return tuple(params)


def critic_forward_ref_f32(state, action, params):
    """Pure-JAX f32 reference of the PyTorch forward pass."""
    sa = jnp.concatenate([state, action], axis=1)
    (w1, b1, w2, b2, w3, b3, w4, b4, w5, b5, w6, b6) = params
    q1 = jax.nn.relu(sa @ w1 + b1)
    q1 = jax.nn.relu(q1 @ w2 + b2)
    q1 = q1 @ w3 + b3
    q2 = jax.nn.relu(sa @ w4 + b4)
    q2 = jax.nn.relu(q2 @ w5 + b5)
    q2 = q2 @ w6 + b6
    return q1, q2


def critic_forward_ref_packed(state, action, packed):
    """Pure-JAX reference doing exactly what the kernel does (f32 layer 1,
    bf16 layers 2/3, f32 accumulation, fused/packed weights)."""
    w14_s, w14_a, b14, w25, b25, w36, b36 = packed
    hg = jnp.maximum(
        jnp.dot(state, w14_s, preferred_element_type=jnp.float32)
        + jnp.dot(action, w14_a, preferred_element_type=jnp.float32)
        + b14, 0.0)
    h = hg[:, :HIDDEN].astype(jnp.bfloat16)
    g = hg[:, HIDDEN:].astype(jnp.bfloat16)
    h2 = jnp.maximum(
        jnp.dot(h, w25[0], preferred_element_type=jnp.float32) + b25[0], 0.0)
    g2 = jnp.maximum(
        jnp.dot(g, w25[1], preferred_element_type=jnp.float32) + b25[1], 0.0)
    q = (jnp.dot(h2.astype(jnp.bfloat16), w36[0],
                 preferred_element_type=jnp.float32)
         + jnp.dot(g2.astype(jnp.bfloat16), w36[1],
                   preferred_element_type=jnp.float32)
         + b36)
    return q[:, 0:1], q[:, 1:2]


if __name__ == "__main__":
    state_dim, action_dim, batch = 17, 6, 8

    key = jax.random.PRNGKey(0)
    kp, ks, ka = jax.random.split(key, 3)
    params = init_critic_params(kp, state_dim, action_dim)
    packed = prepare_critic_params(params, state_dim)
    state = jax.random.normal(ks, (batch, state_dim), jnp.float32)
    action = jax.random.normal(ka, (batch, action_dim), jnp.float32)

    q1, q2 = critic_forward(state, action, packed)
    jax.block_until_ready((q1, q2))
    assert q1.shape == (batch, 1) and q2.shape == (batch, 1)

    # Authoritative check: pure-JAX reference using the identical packed
    # parameters / precision scheme (same math, no Pallas).
    q1_m, q2_m = critic_forward_ref_packed(state, action, packed)
    assert jnp.allclose(q1, q1_m, atol=1e-2, rtol=1e-2), "q1 mismatch (packed ref)"
    assert jnp.allclose(q2, q2_m, atol=1e-2, rtol=1e-2), "q2 mismatch (packed ref)"

    # Loose check vs. the full-precision f32 reference (bf16 layer-2/3
    # operands introduce ~1% relative error).
    q1_f, q2_f = critic_forward_ref_f32(state, action, params)
    assert jnp.allclose(q1, q1_f, atol=1e-1, rtol=1e-1), "q1 mismatch (f32 ref)"
    assert jnp.allclose(q2, q2_f, atol=1e-1, rtol=1e-1), "q2 mismatch (f32 ref)"

    print("KERNEL_OK")
</pallas_src>

<mosaic_0001>
module attributes {stable_mosaic.version = 11 : i64} {
  func.func @_critic_kernel(%arg0: i32, %arg1: memref<8x17xf32, #tpu.memory_space<vmem>>, %arg2: memref<8x6xf32, #tpu.memory_space<vmem>>, %arg3: memref<17x512xf32, #tpu.memory_space<vmem>>, %arg4: memref<6x512xf32, #tpu.memory_space<vmem>>, %arg5: memref<1x512xf32, #tpu.memory_space<vmem>>, %arg6: memref<2x256x256xbf16, #tpu.memory_space<vmem>>, %arg7: memref<2x1x256xf32, #tpu.memory_space<vmem>>, %arg8: memref<2x256x128xbf16, #tpu.memory_space<vmem>>, %arg9: memref<1x128xf32, #tpu.memory_space<vmem>>, %arg10: memref<8x128xf32, #tpu.memory_space<vmem>>) attributes {dimension_semantics = [#tpu.dimension_semantics<parallel>], iteration_bounds = array<i64: 1>, scalar_prefetch = 0 : i64, scratch_operands = 0 : i64, tpu.core_type = #tpu.core_type<tc>, window_params = [{transform_indices = @transform_0, window_bounds = array<i64: 8, 17>}, {transform_indices = @transform_1, window_bounds = array<i64: 8, 6>}, {pipeline_mode = #tpu.pipeline_mode<synchronous>, transform_indices = @transform_2, window_bounds = array<i64: 17, 512>}, {pipeline_mode = #tpu.pipeline_mode<synchronous>, transform_indices = @transform_3, window_bounds = array<i64: 6, 512>}, {pipeline_mode = #tpu.pipeline_mode<synchronous>, transform_indices = @transform_4, window_bounds = array<i64: 1, 512>}, {pipeline_mode = #tpu.pipeline_mode<synchronous>, transform_indices = @transform_5, window_bounds = array<i64: 2, 256, 256>}, {pipeline_mode = #tpu.pipeline_mode<synchronous>, transform_indices = @transform_6, window_bounds = array<i64: 2, 1, 256>}, {pipeline_mode = #tpu.pipeline_mode<synchronous>, transform_indices = @transform_7, window_bounds = array<i64: 2, 256, 128>}, {pipeline_mode = #tpu.pipeline_mode<synchronous>, transform_indices = @transform_8, window_bounds = array<i64: 1, 128>}, {transform_indices = @transform_9, window_bounds = array<i64: 8, 128>}]} {
    %c0 = arith.constant 0 : index
    %c0_0 = arith.constant 0 : index
    %0 = vector.load %arg1[%c0, %c0_0] : memref<8x17xf32, #tpu.memory_space<vmem>>, vector<8x17xf32>
    %c0_1 = arith.constant 0 : index
    %c0_2 = arith.constant 0 : index
    %1 = vector.load %arg3[%c0_1, %c0_2] : memref<17x512xf32, #tpu.memory_space<vmem>>, vector<17x512xf32>
    %cst = arith.constant dense<0.000000e+00> : vector<8x512xf32>
    %2 = tpu.matmul %0, %1, %cst {dimension_numbers = #tpu.dot_dimension_numbers<[1], [0], [0], [1], [0, 0, 1, 1], [], []>} : vector<8x17xf32>, vector<17x512xf32>, vector<8x512xf32> -> vector<8x512xf32>
    %c0_3 = arith.constant 0 : index
    %c0_4 = arith.constant 0 : index
    %3 = vector.load %arg2[%c0_3, %c0_4] : memref<8x6xf32, #tpu.memory_space<vmem>>, vector<8x6xf32>
    %c0_5 = arith.constant 0 : index
    %c0_6 = arith.constant 0 : index
    %4 = vector.load %arg4[%c0_5, %c0_6] : memref<6x512xf32, #tpu.memory_space<vmem>>, vector<6x512xf32>
    %cst_7 = arith.constant dense<0.000000e+00> : vector<8x512xf32>
    %5 = tpu.matmul %3, %4, %cst_7 {dimension_numbers = #tpu.dot_dimension_numbers<[1], [0], [0], [1], [0, 0, 1, 1], [], []>} : vector<8x6xf32>, vector<6x512xf32>, vector<8x512xf32> -> vector<8x512xf32>
    %6 = arith.addf %2, %5 : vector<8x512xf32>
    %c0_8 = arith.constant 0 : index
    %c0_9 = arith.constant 0 : index
    %7 = vector.load %arg5[%c0_8, %c0_9] : memref<1x512xf32, #tpu.memory_space<vmem>>, vector<1x512xf32>
    %8 = vector.broadcast %7 : vector<1x512xf32> to vector<8x512xf32>
    %9 = arith.addf %6, %8 : vector<8x512xf32>
    %cst_10 = arith.constant 0.000000e+00 : f32
    %10 = vector.broadcast %cst_10 : f32 to vector<8x512xf32>
    %11 = arith.maximumf %9, %10 : vector<8x512xf32>
    %12 = vector.extract_strided_slice %11 {offsets = [0, 0], sizes = [8, 256], strides = [1, 1]} : vector<8x512xf32> to vector<8x256xf32>
    %13 = arith.truncf %12 : vector<8x256xf32> to vector<8x256xbf16>
    %14 = vector.extract_strided_slice %11 {offsets = [0, 256], sizes = [8, 256], strides = [1, 1]} : vector<8x512xf32> to vector<8x256xf32>
    %15 = arith.truncf %14 : vector<8x256xf32> to vector<8x256xbf16>
    %c0_11 = arith.constant 0 : index
    %c0_12 = arith.constant 0 : index
    %c0_13 = arith.constant 0 : index
    %16 = vector.load %arg6[%c0_11, %c0_12, %c0_13] : memref<2x256x256xbf16, #tpu.memory_space<vmem>>, vector<1x256x256xbf16>
    %17 = vector.shape_cast %16 : vector<1x256x256xbf16> to vector<256x256xbf16>
    %cst_14 = arith.constant dense<0.000000e+00> : vector<8x256xf32>
    %18 = tpu.matmul %13, %17, %cst_14 {dimension_numbers = #tpu.dot_dimension_numbers<[1], [0], [0], [1], [0, 0, 1, 1], [], []>} : vector<8x256xbf16>, vector<256x256xbf16>, vector<8x256xf32> -> vector<8x256xf32>
    %c0_15 = arith.constant 0 : index
    %c0_16 = arith.constant 0 : index
    %c0_17 = arith.constant 0 : index
    %19 = vector.load %arg7[%c0_15, %c0_16, %c0_17] : memref<2x1x256xf32, #tpu.memory_space<vmem>>, vector<1x1x256xf32>
    %20 = vector.shape_cast %19 : vector<1x1x256xf32> to vector<1x256xf32>
    %21 = vector.broadcast %20 : vector<1x256xf32> to vector<8x256xf32>
    %22 = arith.addf %18, %21 : vector<8x256xf32>
    %cst_18 = arith.constant 0.000000e+00 : f32
    %23 = vector.broadcast %cst_18 : f32 to vector<8x256xf32>
    %24 = arith.maximumf %22, %23 : vector<8x256xf32>
    %c1 = arith.constant 1 : index
    %c0_19 = arith.constant 0 : index
    %c0_20 = arith.constant 0 : index
    %25 = vector.load %arg6[%c1, %c0_19, %c0_20] : memref<2x256x256xbf16, #tpu.memory_space<vmem>>, vector<1x256x256xbf16>
    %26 = vector.shape_cast %25 : vector<1x256x256xbf16> to vector<256x256xbf16>
    %cst_21 = arith.constant dense<0.000000e+00> : vector<8x256xf32>
    %27 = tpu.matmul %15, %26, %cst_21 {dimension_numbers = #tpu.dot_dimension_numbers<[1], [0], [0], [1], [0, 0, 1, 1], [], []>} : vector<8x256xbf16>, vector<256x256xbf16>, vector<8x256xf32> -> vector<8x256xf32>
    %c1_22 = arith.constant 1 : index
    %c0_23 = arith.constant 0 : index
    %c0_24 = arith.constant 0 : index
    %28 = vector.load %arg7[%c1_22, %c0_23, %c0_24] : memref<2x1x256xf32, #tpu.memory_space<vmem>>, vector<1x1x256xf32>
    %29 = vector.shape_cast %28 : vector<1x1x256xf32> to vector<1x256xf32>
    %30 = vector.broadcast %29 : vector<1x256xf32> to vector<8x256xf32>
    %31 = arith.addf %27, %30 : vector<8x256xf32>
    %cst_25 = arith.constant 0.000000e+00 : f32
    %32 = vector.broadcast %cst_25 : f32 to vector<8x256xf32>
    %33 = arith.maximumf %31, %32 : vector<8x256xf32>
    %34 = arith.truncf %24 : vector<8x256xf32> to vector<8x256xbf16>
    %c0_26 = arith.constant 0 : index
    %c0_27 = arith.constant 0 : index
    %c0_28 = arith.constant 0 : index
    %35 = vector.load %arg8[%c0_26, %c0_27, %c0_28] : memref<2x256x128xbf16, #tpu.memory_space<vmem>>, vector<1x256x128xbf16>
    %36 = vector.shape_cast %35 : vector<1x256x128xbf16> to vector<256x128xbf16>
    %cst_29 = arith.constant dense<0.000000e+00> : vector<8x128xf32>
    %37 = tpu.matmul %34, %36, %cst_29 {dimension_numbers = #tpu.dot_dimension_numbers<[1], [0], [0], [1], [0, 0, 1, 1], [], []>} : vector<8x256xbf16>, vector<256x128xbf16>, vector<8x128xf32> -> vector<8x128xf32>
    %38 = arith.truncf %33 : vector<8x256xf32> to vector<8x256xbf16>
    %c1_30 = arith.constant 1 : index
    %c0_31 = arith.constant 0 : index
    %c0_32 = arith.constant 0 : index
    %39 = vector.load %arg8[%c1_30, %c0_31, %c0_32] : memref<2x256x128xbf16, #tpu.memory_space<vmem>>, vector<1x256x128xbf16>
    %40 = vector.shape_cast %39 : vector<1x256x128xbf16> to vector<256x128xbf16>
    %cst_33 = arith.constant dense<0.000000e+00> : vector<8x128xf32>
    %41 = tpu.matmul %38, %40, %cst_33 {dimension_numbers = #tpu.dot_dimension_numbers<[1], [0], [0], [1], [0, 0, 1, 1], [], []>} : vector<8x256xbf16>, vector<256x128xbf16>, vector<8x128xf32> -> vector<8x128xf32>
    %42 = arith.addf %37, %41 : vector<8x128xf32>
    %c0_34 = arith.constant 0 : index
    %c0_35 = arith.constant 0 : index
    %43 = vector.load %arg9[%c0_34, %c0_35] : memref<1x128xf32, #tpu.memory_space<vmem>>, vector<1x128xf32>
    %44 = vector.broadcast %43 : vector<1x128xf32> to vector<8x128xf32>
    %45 = arith.addf %42, %44 : vector<8x128xf32>
    %c0_36 = arith.constant 0 : index
    %c0_37 = arith.constant 0 : index
    %46 = vector.load %arg10[%c0_36, %c0_37] : memref<8x128xf32, #tpu.memory_space<vmem>>, vector<8x128xf32>
    tpu.vector_store %arg10[%c0_36, %c0_37], %45 {strides = array<i32>} : memref<8x128xf32, #tpu.memory_space<vmem>>, vector<8x128xf32>,
    return
  }
  func.func @transform_0(%arg0: i32) -> (i32, i32) {
    %c0_i32 = arith.constant 0 : i32
    %c0_i32_0 = arith.constant 0 : i32
    return %arg0, %c0_i32 : i32, i32
  }
  func.func @transform_1(%arg0: i32) -> (i32, i32) {
    %c0_i32 = arith.constant 0 : i32
    %c0_i32_0 = arith.constant 0 : i32
    return %arg0, %c0_i32 : i32, i32
  }
  func.func @transform_2(%arg0: i32) -> (i32, i32) {
    %c0_i32 = arith.constant 0 : i32
    %c0_i32_0 = arith.constant 0 : i32
    %c0_i32_1 = arith.constant 0 : i32
    return %c0_i32, %c0_i32_0 : i32, i32
  }
  func.func @transform_3(%arg0: i32) -> (i32, i32) {
    %c0_i32 = arith.constant 0 : i32
    %c0_i32_0 = arith.constant 0 : i32
    %c0_i32_1 = arith.constant 0 : i32
    return %c0_i32, %c0_i32_0 : i32, i32
  }
  func.func @transform_4(%arg0: i32) -> (i32, i32) {
    %c0_i32 = arith.constant 0 : i32
    %c0_i32_0 = arith.constant 0 : i32
    %c0_i32_1 = arith.constant 0 : i32
    return %c0_i32, %c0_i32_0 : i32, i32
  }
  func.func @transform_5(%arg0: i32) -> (i32, i32, i32) {
    %c0_i32 = arith.constant 0 : i32
    %c0_i32_0 = arith.constant 0 : i32
    %c0_i32_1 = arith.constant 0 : i32
    %c0_i32_2 = arith.constant 0 : i32
    return %c0_i32, %c0_i32_0, %c0_i32_1 : i32, i32, i32
  }
  func.func @transform_6(%arg0: i32) -> (i32, i32, i32) {
    %c0_i32 = arith.constant 0 : i32
    %c0_i32_0 = arith.constant 0 : i32
    %c0_i32_1 = arith.constant 0 : i32
    %c0_i32_2 = arith.constant 0 : i32
    return %c0_i32, %c0_i32_0, %c0_i32_1 : i32, i32, i32
  }
  func.func @transform_7(%arg0: i32) -> (i32, i32, i32) {
    %c0_i32 = arith.constant 0 : i32
    %c0_i32_0 = arith.constant 0 : i32
    %c0_i32_1 = arith.constant 0 : i32
    %c0_i32_2 = arith.constant 0 : i32
    return %c0_i32, %c0_i32_0, %c0_i32_1 : i32, i32, i32
  }
  func.func @transform_8(%arg0: i32) -> (i32, i32) {
    %c0_i32 = arith.constant 0 : i32
    %c0_i32_0 = arith.constant 0 : i32
    %c0_i32_1 = arith.constant 0 : i32
    return %c0_i32, %c0_i32_0 : i32, i32
  }
  func.func @transform_9(%arg0: i32) -> (i32, i32) {
    %c0_i32 = arith.constant 0 : i32
    %c0_i32_0 = arith.constant 0 : i32
    return %arg0, %c0_i32 : i32, i32
  }
}

</mosaic_0001>

<bundles_post_ra>
// kernel: critic_forward.1
= control target key start
LH: loop header
LB: loop body
LE: loop exit
PB: predicated region body
PF: predicated region fallthrough
CT: control target
= control target key end

     0   :  { %14 = vsyncpa [#allocation3], 0  ;;  %s1999_s0 = inlined_call_operand.hbm [shape: f32[8,17], index: 0, kind: input, shape index: {}]   ;;  %s2000_s1 = inlined_call_operand.hbm [shape: f32[8,6], index: 1, kind: input, shape index: {}]   ;;  %s2001_s2 = inlined_call_operand.hbm [shape: f32[17,512], index: 2, kind: input, shape index: {}]   ;;  %s2002_s3 = inlined_call_operand.hbm [shape: f32[6,512], index: 3, kind: input, shape index: {}]   ;;  %s2003_s4 = inlined_call_operand.hbm [shape: f32[1,512], index: 4, kind: input, shape index: {}]   ;;  %s2004_s5 = inlined_call_operand.hbm [shape: bf16[2,256,256], index: 5, kind: input, shape index: {}]   ;;  %s2005_s6 = inlined_call_operand.vmem [shape: f32[2,1,256], index: 6, kind: input, shape index: {}]   ;;  %s2006_s7 = inlined_call_operand.hbm [shape: bf16[2,256,128], index: 7, kind: input, shape index: {}]   ;;  %s2007_s8 = inlined_call_operand.vmem [shape: f32[1,128], index: 8, kind: input, shape index: {}]   ;;  %s2008_s9 = inlined_call_operand.vmem [shape: f32[8,128], index: 9, kind: output, shape index: {}]  }
   0x1   :  { %15 = vsyncpa [#allocation5], 0 }
   0x2   :  { %16 = vsyncpa [#allocation8], 0  ;;  %s34_s11 = sshll.u32 %s2000_s1, 4  ;;  %s35_s11 = int_to_ptr.hbm [resolvable:$true] %s34_s11 }
   0x3   :  { %17 = vsyncpa [#allocation11], 0  ;;  %s1887_s12 = smov [#allocation4]   ;;  %s58_s16 = sshll.u32 %s2002_s3, 4  ;;  %s59_s16 = int_to_ptr.hbm [resolvable:$true] %s58_s16 }
   0x4   :  { %s36_s13 = sshll.u32 %s1887_s12, 4  ;;  %s1888_s17 = smov [#allocation7]   ;;  %s37_s13 = int_to_ptr.vmem [resolvable:$true] %s36_s13 }
   0x5   :  { %39 = dma.hbm_to_vmem [thread:$0]  %s35_s11, 128, %s37_s13, [#allocation5]  }
   0x6   :  { %s60_s18 = sshll.u32 %s1888_s17, 4  ;;  %s79_s21 = sshll.u32 %s2004_s5, 4  ;;  %s61_s18 = int_to_ptr.vmem [resolvable:$true] %s60_s18  ;;  %s80_s21 = int_to_ptr.hbm [resolvable:$true] %s79_s21 }
   0x7   :  { %63 = dma.hbm_to_vmem [thread:$0]  %s59_s16, 512, %s61_s18, [#allocation8]  }
   0x8   :  { %s1889_s1 = smov [#allocation10]   ;;  %s23_s25 = sshll.u32 %s1999_s0, 4  ;;  %s24_s25 = int_to_ptr.hbm [resolvable:$true] %s23_s25 }
   0x9   :  { %s81_s22 = sshll.u32 %s1889_s1, 4  ;;  %s1890_s26 = smov 128   ;;  %s82_s22 = int_to_ptr.vmem [resolvable:$true] %s81_s22 }
   0xa   :  { %s1891_s3 = smov 8   ;;  %s1892_s27 = smov [#allocation2]  }
   0xb   :  { %87 = dma.hbm_to_vmem [thread:$0]  %s80_s21, 8192, %s82_s22, [#allocation11], %s1890_s26, %s1890_s26, %s1891_s3  }
   0xc   :  { %s25_s28 = sshll.u32 %s1892_s27, 4  ;;  %s44_s5 = sshll.u32 %s2001_s2, 4  ;;  %s26_s28 = int_to_ptr.vmem [resolvable:$true] %s25_s28  ;;  %s45_s5 = int_to_ptr.hbm [resolvable:$true] %s44_s5 }
   0xd   :  { %28 = dma.hbm_to_vmem [thread:$0]  %s24_s25, 128, %s26_s28, [#allocation3]  }
   0xe   :  { %s1893_s10 = smov [#allocation6]   ;;  %s69_s0 = sshll.u32 %s2003_s4, 4  ;;  %s70_s0 = int_to_ptr.hbm [resolvable:$true] %s69_s0 }
   0xf   :  { %s46_s11 = sshll.u32 %s1893_s10, 4  ;;  %s1894_s14 = smov 512   ;;  %s47_s11 = int_to_ptr.vmem [resolvable:$true] %s46_s11 }
  0x10   :  { %s1895_s15 = smov 32   ;;  %s1896_s16 = smov [#allocation9]  }
  0x11   :  { %52 = dma.hbm_to_vmem [thread:$0]  %s45_s5, 1536, %s47_s11, [#allocation5], %s1894_s14, %s1894_s14, %s1895_s15  }
  0x12   :  { %s71_s17 = sshll.u32 %s1896_s16, 4  ;;  %s94_s2 = sshll.u32 %s2006_s7, 4  ;;  %s72_s17 = int_to_ptr.vmem [resolvable:$true] %s71_s17  ;;  %s95_s2 = int_to_ptr.hbm [resolvable:$true] %s94_s2 }
  0x13   :  { %74 = dma.hbm_to_vmem [thread:$0]  %s70_s0, 64, %s72_s17, [#allocation8]  }
  0x14   :  { %s1897_s20 = smov [#allocation12]   ;;  %s1898_s1 = smov 64  }
  0x15   :  { %s96_s21 = sshll.u32 %s1897_s20, 4  ;;  %s1899_s22 = smov 4   ;;  %s97_s21 = int_to_ptr.vmem [resolvable:$true] %s96_s21 }
  0x16   :  { %102 = dma.hbm_to_vmem [thread:$0]  %s95_s2, 4096, %s97_s21, [#allocation11], %s1898_s1, %s1898_s1, %s1899_s22  }
  0x17   :  { %1879 = dma.done.wait [#allocation3], 128  }
  0x18   :  { %1880 = vsyncadd [#allocation3], 4294967168 }
  0x19   :  { %1881 = dma.done.wait [#allocation5], 1664  }
  0x1a   :  { %1882 = vsyncadd [#allocation5], 4294965632 }
  0x1b   :  { %1883 = dma.done.wait [#allocation8], 576  }
  0x1c   :  { %1884 = vsyncadd [#allocation8], 4294966720 }
  0x1d   :  { %1885 = dma.done.wait [#allocation11], 12288  }
  0x1e   :  { %1886 = vsyncadd [#allocation11], 4294955008  ;;  %vm155_vm0 = vcmask 1045504   ;;  %vm151_vm1 = vcmask 48128   ;;  %v147_v0 = vld [vmem:[#allocation7] sm:$0x3f] }
  0x1f   :  { %v148_v1 = vld [vmem:[#allocation7 + $0x8] sm:$0x3f]  ;;  %v146_v2 = vld [vmem:[#allocation4] sm:$0xff]  ;;  %vm252_vm2 = vcmask 1040384   ;;  %1200 = vmatpush.msk.msra.mxu0 %vm155_vm0, %v147_v0  ;;  %v142_v3 = vld [vmem:[#allocation6 + $0x40] sm:$0x1] }
  0x20   :  { %1202 = vmatpush.msk.msra.mxu1 %vm155_vm0, %v148_v1  ;;  %v149_v4 = vld [vmem:[#allocation7 + $0x10] sm:$0x3f]  ;;  %v143_v5 = vld [vmem:[#allocation6 + $0x48] sm:$0x1]  ;;  %1201 = vmatmul.msk.f32.vlgmr.msra.gmra.mxu0 %vm151_vm1, %v146_v2  ;;  %v150_v6 = vld [vmem:[#allocation7 + $0x18] sm:$0x3f] }
  0x21   :  { %1203 = vmatmul.msk.f32.vlgmr.msra.gmra.mxu1 %vm151_vm1, %v146_v2  ;;  %v138_v7 = vld [vmem:[#allocation6 + $0x20] sm:$0xff]  ;;  %1208 = vmatpush.msk.msrb.mxu0 %vm252_vm2, %v142_v3  ;;  %v139_v8 = vld [vmem:[#allocation6 + $0x28] sm:$0xff]  ;;  %v144_v9 = vld [vmem:[#allocation6 + $0x50] sm:$0x1]  ;;  %vm248_vm3 = vcmask 138240  }
  0x22   :  { %1204 = vmatpush.msk.msra.mxu2 %vm155_vm0, %v149_v4  ;;  %1210 = vmatpush.msk.msrb.mxu1 %vm252_vm2, %v143_v5  ;;  %v134_v10 = vld [vmem:[#allocation6] sm:$0xff]  ;;  %v135_v11 = vld [vmem:[#allocation6 + $0x8] sm:$0xff]  ;;  %v140_v12 = vld [vmem:[#allocation6 + $0x30] sm:$0xff] }
  0x23   :  { %1205 = vmatmul.msk.f32.vlgmr.msra.gmra.mxu2 %vm151_vm1, %v146_v2  ;;  %1206 = vmatpush.msk.msra.mxu3 %vm155_vm0, %v150_v6  ;;  %v145_v13 = vld [vmem:[#allocation6 + $0x58] sm:$0x1]  ;;  %v133_v14 = vld [vmem:[#allocation2] sm:$0xff]  ;;  %v1616_v18 = vld [vmem:[#allocation10 + $0x74] sm:$0xf0] }
  0x24   :  { %279 = vmatpush.msrb.mxu0 %v138_v7  ;;  %1207 = vmatmul.msk.f32.vlgmr.msra.gmra.mxu3 %vm151_vm1, %v146_v2  ;;  %v136_v15 = vld [vmem:[#allocation6 + $0x10] sm:$0xff]  ;;  %v141_v16 = vld [vmem:[#allocation6 + $0x38] sm:$0xff]  ;;  %v1276_v23 = vld [vmem:[#allocation10 + $0x78] sm:$0xf0] }
  0x25   :  { %299 = vmatpush.msrb.mxu1 %v139_v8  ;;  %v1274_v17 = vld [vmem:[#allocation10 + $0x70] sm:$0xf]  ;;  %1212 = vmatpush.msk.msrb.mxu2 %vm252_vm2, %v144_v9  ;;  %v1632_v21 = vld [vmem:[#allocation10 + $0xf4] sm:$0xf0]  ;;  %v1615_v22 = vld [vmem:[#allocation10 + $0x74] sm:$0xf] }
  0x26   :  { %v1338_v19 = vld [vmem:[#allocation10 + $0xf0] sm:$0xf]  ;;  %280 = vmatpush.msrb.mxu0 %v134_v10  ;;  %v1275_v20 = vor.u32 %v1616_v18, %v1274_v17  ;;  %1214 = vmatpush.msk.msrb.mxu3 %vm252_vm2, %v145_v13  ;;  %v1631_v25 = vld [vmem:[#allocation10 + $0xf4] sm:$0xf]  ;;  %v1340_v26 = vld [vmem:[#allocation10 + $0xf8] sm:$0xf0]  ;;  %v1279_v28 = vor.u32 %v1615_v22, %v1276_v23 }
  0x27   :  { %300 = vmatpush.msrb.mxu1 %v135_v11  ;;  %v1339_v24 = vor.u32 %v1632_v21, %v1338_v19  ;;  %v1266_v27 = vld [vmem:[#allocation10 + $0x60] sm:$0xf]  ;;  %319 = vmatpush.msrb.mxu2 %v140_v12  ;;  %v1614_v29 = vld [vmem:[#allocation10 + $0x64] sm:$0xf0]  ;;  %v137_v32 = vld [vmem:[#allocation6 + $0x18] sm:$0xff]  ;;  %v1343_v36 = vor.u32 %v1631_v25, %v1340_v26 }
  0x28   :  { %565 = vmatpush.bf16.msra.mxu0 %v1275_v20  ;;  %v1330_v30 = vld [vmem:[#allocation10 + $0xe0] sm:$0xf]  ;;  %v1630_v31 = vld [vmem:[#allocation10 + $0xe4] sm:$0xf0]  ;;  %v1267_v33 = vor.u32 %v1614_v29, %v1266_v27  ;;  %v1613_v34 = vld [vmem:[#allocation10 + $0x64] sm:$0xf]  ;;  %339 = vmatpush.msrb.mxu3 %v141_v16 }
  0x29   :  { %1209 = vmatmul.msk.f32.vlgmr.msrb.gmra.mxu0 %vm248_vm3, %v133_v14  ;;  %1211 = vmatmul.msk.f32.vlgmr.msrb.gmra.mxu1 %vm248_vm3, %v133_v14  ;;  %v1268_v35 = vld [vmem:[#allocation10 + $0x68] sm:$0xf0]  ;;  %v1258_v37 = vld [vmem:[#allocation10 + $0x50] sm:$0xf]  ;;  %v1612_v38 = vld [vmem:[#allocation10 + $0x54] sm:$0xf0]  ;;  %v1331_v39 = vor.u32 %v1630_v31, %v1330_v30 }
  0x2a   :  { %320 = vmatpush.msrb.mxu2 %v136_v15  ;;  %578 = vmatpush.bf16.msra.mxu1 %v1339_v24  ;;  %v1629_v40 = vld [vmem:[#allocation10 + $0xe4] sm:$0xf]  ;;  %v1332_v41 = vld [vmem:[#allocation10 + $0xe8] sm:$0xf0]  ;;  %v1271_v42 = vor.u32 %v1613_v34, %v1268_v35  ;;  %v1322_v43 = vld [vmem:[#allocation10 + $0xd0] sm:$0xf]  ;;  %v1259_v45 = vor.u32 %v1612_v38, %v1258_v37 }
  0x2b   :  { %1213 = vmatmul.msk.f32.vlgmr.msrb.gmra.mxu2 %vm248_vm3, %v133_v14  ;;  %340 = vmatpush.msrb.mxu3 %v137_v32  ;;  %v1628_v44 = vld [vmem:[#allocation10 + $0xd4] sm:$0xf0]  ;;  %v1611_v46 = vld [vmem:[#allocation10 + $0x54] sm:$0xf]  ;;  %v1260_v47 = vld [vmem:[#allocation10 + $0x58] sm:$0xf0]  ;;  %v1335_v48 = vor.u32 %v1629_v40, %v1332_v41 }
  0x2c   :  { %591 = vmatpush.bf16.msra.mxu2 %v1279_v28  ;;  %1215 = vmatmul.msk.f32.vlgmr.msrb.gmra.mxu3 %vm248_vm3, %v133_v14  ;;  %v1250_v49 = vld [vmem:[#allocation10 + $0x40] sm:$0xf]  ;;  %v1610_v50 = vld [vmem:[#allocation10 + $0x44] sm:$0xf0]  ;;  %v1323_v51 = vor.u32 %v1628_v44, %v1322_v43  ;;  %v1627_v52 = vld [vmem:[#allocation10 + $0xd4] sm:$0xf]  ;;  %v1263_v54 = vor.u32 %v1611_v46, %v1260_v47 }
  0x2d   :  { %566 = vmatpush.bf16.msra.mxu0 %v1267_v33  ;;  %604 = vmatpush.bf16.msra.mxu3 %v1343_v36  ;;  %v1324_v53 = vld [vmem:[#allocation10 + $0xd8] sm:$0xf0]  ;;  %v1314_v55 = vld [vmem:[#allocation10 + $0xc0] sm:$0xf]  ;;  %v1626_v56 = vld [vmem:[#allocation10 + $0xc4] sm:$0xf0]  ;;  %v1251_v57 = vor.u32 %v1610_v50, %v1250_v49 }
  0x2e   :  { %579 = vmatpush.bf16.msra.mxu1 %v1331_v39  ;;  %v1609_v58 = vld [vmem:[#allocation10 + $0x44] sm:$0xf]  ;;  %v1252_v59 = vld [vmem:[#allocation10 + $0x48] sm:$0xf0]  ;;  %v1327_v60 = vor.u32 %v1627_v52, %v1324_v53  ;;  %v1242_v61 = vld [vmem:[#allocation10 + $0x30] sm:$0xf]  ;;  %v1315_v63 = vor.u32 %v1626_v56, %v1314_v55 }
  0x2f   :  { %v1608_v62 = vld [vmem:[#allocation10 + $0x34] sm:$0xf0]  ;;  %v1625_v0 = vld [vmem:[#allocation10 + $0xc4] sm:$0xf]  ;;  %v1316_v1 = vld [vmem:[#allocation10 + $0xc8] sm:$0xf0]  ;;  %v1255_v2 = vor.u32 %v1609_v58, %v1252_v59 }
  0x30   :  { %592 = vmatpush.bf16.msra.mxu2 %v1271_v42  ;;  %v1306_v3 = vld [vmem:[#allocation10 + $0xb0] sm:$0xf]  ;;  %v1624_v4 = vld [vmem:[#allocation10 + $0xb4] sm:$0xf0]  ;;  %v1243_v5 = vor.u32 %v1608_v62, %v1242_v61  ;;  %v1607_v6 = vld [vmem:[#allocation10 + $0x34] sm:$0xf]  ;;  %v1319_v8 = vor.u32 %v1625_v0, %v1316_v1 }
  0x31   :  { %567 = vmatpush.bf16.msra.mxu0 %v1259_v45  ;;  %605 = vmatpush.bf16.msra.mxu3 %v1335_v48  ;;  %v1244_v7 = vld [vmem:[#allocation10 + $0x38] sm:$0xf0]  ;;  %v1234_v9 = vld [vmem:[#allocation10 + $0x20] sm:$0xf]  ;;  %v1606_v10 = vld [vmem:[#allocation10 + $0x24] sm:$0xf0]  ;;  %v1307_v11 = vor.u32 %v1624_v4, %v1306_v3 }
  0x32   :  { %580 = vmatpush.bf16.msra.mxu1 %v1323_v51  ;;  %v1623_v12 = vld [vmem:[#allocation10 + $0xb4] sm:$0xf]  ;;  %v1308_v13 = vld [vmem:[#allocation10 + $0xb8] sm:$0xf0]  ;;  %v1247_v14 = vor.u32 %v1607_v6, %v1244_v7  ;;  %v1298_v15 = vld [vmem:[#allocation10 + $0xa0] sm:$0xf]  ;;  %v1235_v17 = vor.u32 %v1606_v10, %v1234_v9 }
  0x33   :  { %v1622_v16 = vld [vmem:[#allocation10 + $0xa4] sm:$0xf0]  ;;  %v1605_v18 = vld [vmem:[#allocation10 + $0x24] sm:$0xf]  ;;  %v1236_v19 = vld [vmem:[#allocation10 + $0x28] sm:$0xf0]  ;;  %v1311_v20 = vor.u32 %v1623_v12, %v1308_v13 }
  0x34   :  { %593 = vmatpush.bf16.msra.mxu2 %v1263_v54  ;;  %v1226_v21 = vld [vmem:[#allocation10 + $0x10] sm:$0xf]  ;;  %v1604_v22 = vld [vmem:[#allocation10 + $0x14] sm:$0xf0]  ;;  %v1299_v23 = vor.u32 %v1622_v16, %v1298_v15  ;;  %v1621_v24 = vld [vmem:[#allocation10 + $0xa4] sm:$0xf]  ;;  %v1239_v26 = vor.u32 %v1605_v18, %v1236_v19 }
  0x35   :  { %568 = vmatpush.bf16.msra.mxu0 %v1251_v57  ;;  %606 = vmatpush.bf16.msra.mxu3 %v1327_v60  ;;  %v1300_v25 = vld [vmem:[#allocation10 + $0xa8] sm:$0xf0]  ;;  %v1290_v27 = vld [vmem:[#allocation10 + $0x90] sm:$0xf]  ;;  %v1620_v28 = vld [vmem:[#allocation10 + $0x94] sm:$0xf0]  ;;  %v1227_v29 = vor.u32 %v1604_v22, %v1226_v21 }
  0x36   :  { %581 = vmatpush.bf16.msra.mxu1 %v1315_v63  ;;  %v1603_v30 = vld [vmem:[#allocation10 + $0x14] sm:$0xf]  ;;  %v1228_v31 = vld [vmem:[#allocation10 + $0x18] sm:$0xf0]  ;;  %v1303_v32 = vor.u32 %v1621_v24, %v1300_v25  ;;  %v1291_v33 = vor.u32 %v1620_v28, %v1290_v27  ;;  %v1218_v38 = vld [vmem:[#allocation10] sm:$0xf] }
  0x37   :  { %v1619_v34 = vld [vmem:[#allocation10 + $0x94] sm:$0xf]  ;;  %v1292_v35 = vld [vmem:[#allocation10 + $0x98] sm:$0xf0]  ;;  %v1231_v36 = vor.u32 %v1603_v30, %v1228_v31  ;;  %v1602_v39 = vld [vmem:[#allocation10 + $0x4] sm:$0xf0] }
  0x38   :  { %594 = vmatpush.bf16.msra.mxu2 %v1255_v2  ;;  %v1295_v37 = vor.u32 %v1619_v34, %v1292_v35  ;;  %v1282_v40 = vld [vmem:[#allocation10 + $0x80] sm:$0xf]  ;;  %v1219_v41 = vor.u32 %v1602_v39, %v1218_v38  ;;  %v1618_v42 = vld [vmem:[#allocation10 + $0x84] sm:$0xf0]  ;;  %v1601_v43 = vld [vmem:[#allocation10 + $0x4] sm:$0xf] }
  0x39   :  { %569 = vmatpush.bf16.msra.mxu0 %v1243_v5  ;;  %607 = vmatpush.bf16.msra.mxu3 %v1319_v8  ;;  %v1220_v44 = vld [vmem:[#allocation10 + $0x8] sm:$0xf0]  ;;  %v1283_v45 = vor.u32 %v1618_v42, %v1282_v40  ;;  %v1617_v47 = vld [vmem:[#allocation10 + $0x84] sm:$0xf]  ;;  %v1403_v49 = vld [vmem:[#allocation10 + $0x170] sm:$0xf] }
  0x3a   :  { %582 = vmatpush.bf16.msra.mxu1 %v1307_v11  ;;  %v1223_v46 = vor.u32 %v1601_v43, %v1220_v44  ;;  %v1284_v48 = vld [vmem:[#allocation10 + $0x88] sm:$0xf0]  ;;  %v1648_v51 = vld [vmem:[#allocation10 + $0x174] sm:$0xf0]  ;;  %v1467_v52 = vld [vmem:[#allocation10 + $0x1f0] sm:$0xf] }
  0x3b   :  { %v1287_v50 = vor.u32 %v1617_v47, %v1284_v48  ;;  %v1664_v53 = vld [vmem:[#allocation10 + $0x1f4] sm:$0xf0]  ;;  %v1404_v54 = vor.u32 %v1648_v51, %v1403_v49  ;;  %v1647_v56 = vld [vmem:[#allocation10 + $0x174] sm:$0xf]  ;;  %v1405_v57 = vld [vmem:[#allocation10 + $0x178] sm:$0xf0] }
  0x3c   :  { %595 = vmatpush.bf16.msra.mxu2 %v1247_v14  ;;  %v1468_v55 = vor.u32 %v1664_v53, %v1467_v52  ;;  %v1663_v58 = vld [vmem:[#allocation10 + $0x1f4] sm:$0xf]  ;;  %v1408_v59 = vor.u32 %v1647_v56, %v1405_v57  ;;  %v1469_v60 = vld [vmem:[#allocation10 + $0x1f8] sm:$0xf0]  ;;  %v1395_v61 = vld [vmem:[#allocation10 + $0x160] sm:$0xf] }
  0x3d   :  { %570 = vmatpush.bf16.msra.mxu0 %v1235_v17  ;;  %608 = vmatpush.bf16.msra.mxu3 %v1311_v20  ;;  %v1646_v62 = vld [vmem:[#allocation10 + $0x164] sm:$0xf0]  ;;  %v1472_v63 = vor.u32 %v1663_v58, %v1469_v60  ;;  %v1459_v1 = vld [vmem:[#allocation10 + $0x1e0] sm:$0xf]  ;;  %v1645_v3 = vld [vmem:[#allocation10 + $0x164] sm:$0xf] }
  0x3e   :  { %583 = vmatpush.bf16.msra.mxu1 %v1299_v23  ;;  %v1396_v0 = vor.u32 %v1646_v62, %v1395_v61  ;;  %v1662_v2 = vld [vmem:[#allocation10 + $0x1e4] sm:$0xf0]  ;;  %v1397_v5 = vld [vmem:[#allocation10 + $0x168] sm:$0xf0]  ;;  %v1661_v6 = vld [vmem:[#allocation10 + $0x1e4] sm:$0xf] }
  0x3f   :  { %v1460_v4 = vor.u32 %v1662_v2, %v1459_v1  ;;  %v1461_v7 = vld [vmem:[#allocation10 + $0x1e8] sm:$0xf0]  ;;  %v1400_v8 = vor.u32 %v1645_v3, %v1397_v5  ;;  %v1387_v10 = vld [vmem:[#allocation10 + $0x150] sm:$0xf]  ;;  %v1644_v11 = vld [vmem:[#allocation10 + $0x154] sm:$0xf0] }
  0x40   :  { %596 = vmatpush.bf16.msra.mxu2 %v1239_v26  ;;  %v1464_v9 = vor.u32 %v1661_v6, %v1461_v7  ;;  %v1388_v12 = vor.u32 %v1644_v11, %v1387_v10  ;;  %v1451_v13 = vld [vmem:[#allocation10 + $0x1d0] sm:$0xf]  ;;  %v1660_v14 = vld [vmem:[#allocation10 + $0x1d4] sm:$0xf0]  ;;  %v1643_v16 = vld [vmem:[#allocation10 + $0x154] sm:$0xf] }
  0x41   :  { %571 = vmatpush.bf16.msra.mxu0 %v1227_v29  ;;  %609 = vmatpush.bf16.msra.mxu3 %v1303_v32  ;;  %v1452_v15 = vor.u32 %v1660_v14, %v1451_v13  ;;  %v1389_v17 = vld [vmem:[#allocation10 + $0x158] sm:$0xf0]  ;;  %v1659_v19 = vld [vmem:[#allocation10 + $0x1d4] sm:$0xf]  ;;  %v1379_v22 = vld [vmem:[#allocation10 + $0x140] sm:$0xf] }
  0x42   :  { %584 = vmatpush.bf16.msra.mxu1 %v1291_v33  ;;  %v1392_v18 = vor.u32 %v1643_v16, %v1389_v17  ;;  %v1453_v20 = vld [vmem:[#allocation10 + $0x1d8] sm:$0xf0]  ;;  %v1642_v23 = vld [vmem:[#allocation10 + $0x144] sm:$0xf0]  ;;  %v1443_v24 = vld [vmem:[#allocation10 + $0x1c0] sm:$0xf] }
  0x43   :  { %v1456_v21 = vor.u32 %v1659_v19, %v1453_v20  ;;  %v1380_v25 = vor.u32 %v1642_v23, %v1379_v22  ;;  %v1658_v26 = vld [vmem:[#allocation10 + $0x1c4] sm:$0xf0]  ;;  %v1641_v27 = vld [vmem:[#allocation10 + $0x144] sm:$0xf]  ;;  %v1381_v28 = vld [vmem:[#allocation10 + $0x148] sm:$0xf0] }
  0x44   :  { %597 = vmatpush.bf16.msra.mxu2 %v1231_v36  ;;  %v1444_v29 = vor.u32 %v1658_v26, %v1443_v24  ;;  %v1384_v30 = vor.u32 %v1641_v27, %v1381_v28  ;;  %v1657_v31 = vld [vmem:[#allocation10 + $0x1c4] sm:$0xf]  ;;  %v1445_v32 = vld [vmem:[#allocation10 + $0x1c8] sm:$0xf0]  ;;  %v1371_v34 = vld [vmem:[#allocation10 + $0x130] sm:$0xf] }
  0x45   :  { %610 = vmatpush.bf16.msra.mxu3 %v1295_v37  ;;  %572 = vmatpush.bf16.msra.mxu0 %v1219_v41  ;;  %v1448_v33 = vor.u32 %v1657_v31, %v1445_v32  ;;  %v1640_v35 = vld [vmem:[#allocation10 + $0x134] sm:$0xf0]  ;;  %v1435_v36 = vld [vmem:[#allocation10 + $0x1b0] sm:$0xf]  ;;  %v1639_v39 = vld [vmem:[#allocation10 + $0x134] sm:$0xf] }
  0x46   :  { %585 = vmatpush.bf16.msra.mxu1 %v1283_v45  ;;  %v1372_v37 = vor.u32 %v1640_v35, %v1371_v34  ;;  %v1656_v38 = vld [vmem:[#allocation10 + $0x1b4] sm:$0xf0]  ;;  %v1373_v41 = vld [vmem:[#allocation10 + $0x138] sm:$0xf0]  ;;  %v1655_v42 = vld [vmem:[#allocation10 + $0x1b4] sm:$0xf] }
  0x47   :  { %v1436_v40 = vor.u32 %v1656_v38, %v1435_v36  ;;  %v1437_v43 = vld [vmem:[#allocation10 + $0x1b8] sm:$0xf0]  ;;  %v1376_v44 = vor.u32 %v1639_v39, %v1373_v41  ;;  %v1638_v47 = vld [vmem:[#allocation10 + $0x124] sm:$0xf0]  ;;  %v1427_v49 = vld [vmem:[#allocation10 + $0x1a0] sm:$0xf] }
  0x48   :  { %598 = vmatpush.bf16.msra.mxu2 %v1223_v46  ;;  %v1440_v45 = vor.u32 %v1655_v42, %v1437_v43  ;;  %v1363_v46 = vld [vmem:[#allocation10 + $0x120] sm:$0xf]  ;;  %v1637_v51 = vld [vmem:[#allocation10 + $0x124] sm:$0xf]  ;;  %v1365_v53 = vld [vmem:[#allocation10 + $0x128] sm:$0xf0] }
  0x49   :  { %611 = vmatpush.bf16.msra.mxu3 %v1287_v50  ;;  %819 = vmatpush.bf16.msrb.mxu0 %v1404_v54  ;;  %v1364_v48 = vor.u32 %v1638_v47, %v1363_v46  ;;  %v1654_v50 = vld [vmem:[#allocation10 + $0x1a4] sm:$0xf0]  ;;  %v1653_v54 = vld [vmem:[#allocation10 + $0x1a4] sm:$0xf]  ;;  %v1368_v56 = vor.u32 %v1637_v51, %v1365_v53  ;;  %v1355_v58 = vld [vmem:[#allocation10 + $0x110] sm:$0xf] }
  0x4a   :  { %832 = vmatpush.bf16.msrb.mxu1 %v1468_v55  ;;  %v1428_v52 = vor.u32 %v1654_v50, %v1427_v49  ;;  %v1429_v55 = vld [vmem:[#allocation10 + $0x1a8] sm:$0xf0]  ;;  %v1419_v60 = vld [vmem:[#allocation10 + $0x190] sm:$0xf]  ;;  %v1652_v62 = vld [vmem:[#allocation10 + $0x194] sm:$0xf0] }
  0x4b   :  { %v1432_v57 = vor.u32 %v1653_v54, %v1429_v55  ;;  %v1420_v1 = vor.u32 %v1652_v62, %v1419_v60  ;;  %v1651_v3 = vld [vmem:[#allocation10 + $0x194] sm:$0xf]  ;;  %v1347_v5 = vld [vmem:[#allocation10 + $0x100] sm:$0xf]  ;;  %v1634_v7 = vld [vmem:[#allocation10 + $0x104] sm:$0xf0] }
  0x4c   :  { %845 = vmatpush.bf16.msrb.mxu2 %v1408_v59  ;;  %v1636_v59 = vld [vmem:[#allocation10 + $0x114] sm:$0xf0]  ;;  %v1348_v10 = vor.u32 %v1634_v7, %v1347_v5  ;;  %v1349_v13 = vld [vmem:[#allocation10 + $0x108] sm:$0xf0]  ;;  %v1649_v14 = vld [vmem:[#allocation10 + $0x184] sm:$0xf] }
  0x4d   :  { %858 = vmatpush.bf16.msrb.mxu3 %v1472_v63  ;;  %820 = vmatpush.bf16.msrb.mxu0 %v1396_v0  ;;  %v1356_v61 = vor.u32 %v1636_v59, %v1355_v58  ;;  %v1635_v63 = vld [vmem:[#allocation10 + $0x114] sm:$0xf]  ;;  %v1357_v0 = vld [vmem:[#allocation10 + $0x118] sm:$0xf0]  ;;  %v1413_v16 = vld [vmem:[#allocation10 + $0x188] sm:$0xf0] }
  0x4e   :  { %833 = vmatpush.bf16.msrb.mxu1 %v1460_v4  ;;  %v1360_v2 = vor.u32 %v1635_v63, %v1357_v0  ;;  %v1421_v4 = vld [vmem:[#allocation10 + $0x198] sm:$0xf0]  ;;  %v1416_v17 = vor.u32 %v1649_v14, %v1413_v16  ;;  %v1671_v42 = vld [vmem:[#allocation12 + $0x30] sm:$0xff]  ;;  %v1678_v49 = vld [vmem:[#allocation12 + $0x68] sm:$0xff] }
  0x4f   :  { %v1424_v6 = vor.u32 %v1651_v3, %v1421_v4  ;;  %v345_v20 = vld [vmem:[#allocation9] sm:$0xf]  ;;  %v1679_v43 = vld [vmem:[#allocation12 + $0x70] sm:$0xff]  ;;  %v1677_v53 = vld [vmem:[#allocation12 + $0x60] sm:$0xff] }
  0x50   :  { %846 = vmatpush.bf16.msrb.mxu2 %v1400_v8  ;;  %v1411_v8 = vld [vmem:[#allocation10 + $0x180] sm:$0xf]  ;;  %v348_v24 = vperm.slane %v345_v20, 1  ;;  %v1672_v34 = vld [vmem:[#allocation12 + $0x38] sm:$0xff]  ;;  %v349_v41 = vperm.slane %v345_v20, 2  ;;  %v1687_v46 = vld [vmem:[#allocation12 + $0xb0] sm:$0xff] }
  0x51   :  { %859 = vmatpush.bf16.msrb.mxu3 %v1464_v9  ;;  %821 = vmatpush.bf16.msrb.mxu0 %v1388_v12  ;;  %v1650_v9 = vld [vmem:[#allocation10 + $0x184] sm:$0xf0]  ;;  %v1633_v12 = vld [vmem:[#allocation10 + $0x104] sm:$0xf]  ;;  %v1680_v35 = vld [vmem:[#allocation12 + $0x78] sm:$0xff] }
  0x52   :  { %834 = vmatpush.bf16.msrb.mxu1 %v1452_v15  ;;  %v1412_v11 = vor.u32 %v1650_v9, %v1411_v8  ;;  %v1352_v15 = vor.u32 %v1633_v12, %v1349_v13  ;;  %v1688_v38 = vld [vmem:[#allocation12 + $0xb8] sm:$0xff]  ;;  %v1667_v58 = vld [vmem:[#allocation12 + $0x10] sm:$0xff]  ;;  %v1666_v62 = vld [vmem:[#allocation12 + $0x8] sm:$0xff] }
  0x53   :  { %v1696_v59 = vld [vmem:[#allocation12 + $0xf8] sm:$0xff]  ;;  %v1695_v63 = vld [vmem:[#allocation12 + $0xf0] sm:$0xff]  ;;  %v1694_v3 = vld [vmem:[#allocation12 + $0xe8] sm:$0xff] }
  0x54   :  { %847 = vmatpush.bf16.msrb.mxu2 %v1392_v18  ;;  %v1676_v60 = vld [vmem:[#allocation12 + $0x58] sm:$0xff]  ;;  %v1675_v0 = vld [vmem:[#allocation12 + $0x50] sm:$0xff]  ;;  %v1674_v4 = vld [vmem:[#allocation12 + $0x48] sm:$0xff] }
  0x55   :  { %860 = vmatpush.bf16.msrb.mxu3 %v1456_v21  ;;  %822 = vmatpush.bf16.msrb.mxu0 %v1380_v25  ;;  %v347_v21 = vperm.slane %v345_v20, 0  ;;  %v1684_v5 = vld [vmem:[#allocation12 + $0x98] sm:$0xff]  ;;  %v1673_v7 = vld [vmem:[#allocation12 + $0x40] sm:$0xff]  ;;  %v1683_v8 = vld [vmem:[#allocation12 + $0x90] sm:$0xff] }
  0x56   :  { %835 = vmatpush.bf16.msrb.mxu1 %v1444_v29  ;;  %v1692_v9 = vld [vmem:[#allocation12 + $0xd8] sm:$0xff]  ;;  %v1681_v12 = vld [vmem:[#allocation12 + $0x80] sm:$0xff]  ;;  %v1690_v13 = vld [vmem:[#allocation12 + $0xc8] sm:$0xff] }
  0x57   :  { %v399_v14 = vld [vmem:[%s2005_s6] sm:$0x3] }
  0x58   :  { %848 = vmatpush.bf16.msrb.mxu2 %v1384_v30  ;;  %v401_v16 = vperm.slane %v399_v14, 0 }
  0x59   :  { %861 = vmatpush.bf16.msrb.mxu3 %v1448_v33  ;;  %823 = vmatpush.bf16.msrb.mxu0 %v1372_v37 }
  0x5a   :  { %836 = vmatpush.bf16.msrb.mxu1 %v1436_v40 }
  0x5c   :  { %849 = vmatpush.bf16.msrb.mxu2 %v1376_v44 }
  0x5d   :  { %862 = vmatpush.bf16.msrb.mxu3 %v1440_v45  ;;  %824 = vmatpush.bf16.msrb.mxu0 %v1364_v48  ;;  %v350_v45 = vperm.slane %v345_v20, 3  ;;  %v1670_v48 = vld [vmem:[#allocation12 + $0x28] sm:$0xff] }
  0x5e   :  { %837 = vmatpush.bf16.msrb.mxu1 %v1428_v52  ;;  %v1669_v52 = vld [vmem:[#allocation12 + $0x20] sm:$0xff] }
  0x60   :  { %850 = vmatpush.bf16.msrb.mxu2 %v1368_v56  ;;  %v1668_v56 = vld [vmem:[#allocation12 + $0x18] sm:$0xff] }
  0x61   :  { %863 = vmatpush.bf16.msrb.mxu3 %v1432_v57  ;;  %825 = vmatpush.bf16.msrb.mxu0 %v1356_v61  ;;  %v1686_v61 = vld [vmem:[#allocation12 + $0xa8] sm:$0xff] }
  0x62   :  { %838 = vmatpush.bf16.msrb.mxu1 %v1420_v1  ;;  %v1685_v1 = vld [vmem:[#allocation12 + $0xa0] sm:$0xff] }
  0x64   :  { %851 = vmatpush.bf16.msrb.mxu2 %v1360_v2  ;;  %v1665_v2 = vld [vmem:[#allocation12] sm:$0xff] }
  0x65   :  { %864 = vmatpush.bf16.msrb.mxu3 %v1424_v6  ;;  %826 = vmatpush.bf16.msrb.mxu0 %v1348_v10  ;;  %v1693_v6 = vld [vmem:[#allocation12 + $0xe0] sm:$0xff]  ;;  %v1682_v10 = vld [vmem:[#allocation12 + $0x88] sm:$0xff] }
  0x66   :  { %839 = vmatpush.bf16.msrb.mxu1 %v1412_v11  ;;  %v1691_v11 = vld [vmem:[#allocation12 + $0xd0] sm:$0xff] }
  0x68   :  { %852 = vmatpush.bf16.msrb.mxu2 %v1352_v15  ;;  %v1689_v15 = vld [vmem:[#allocation12 + $0xc0] sm:$0xff] }
  0x69   :  { %865 = vmatpush.bf16.msrb.mxu3 %v1416_v17 }
  0x9d   :  { %v185_v18 = vpop.f32.mrf.mxu0 }
  0x9e   :  { %v205_v19 = vpop.f32.mrf.mxu1 }
  0xa6   :  { %v225_v22 = vpop.f32.mrf.mxu2  ;;  %v282_v23 = vpop.f32.mrf.mxu0 }
  0xa7   :  { %v283_v25 = vadd.f32 %v282_v23, %v185_v18  ;;  %v302_v26 = vpop.f32.mrf.mxu1  ;;  %v245_v28 = vpop.f32.mrf.mxu3 }
  0xa8   :  { %v303_v27 = vadd.f32 %v302_v26, %v205_v19 }
  0xa9   :  { %v355_v29 = vadd.f32 %v347_v21, %v283_v25  ;;  %v402_v21 = vperm.slane %v399_v14, 1 }
  0xaa   :  { %v356_v30 = vadd.f32 %v348_v24, %v303_v27 }
  0xab   :  { %v359_v31 = vmax.f32 %v355_v29, 0.0 }
  0xac   :  { %v360_v32 = vmax.f32 %v356_v30, 0.0  ;;  %v1344_v30 = vld [vmem:[%s2005_s6 + $0x2] sm:$0x3] }
  0xad   :  { %v363_v33 = vpack.c.bf16 %v359_v31, %v359_v31 }
  0xae   :  { %v364_v36 = vpack.c.bf16 %v360_v32, %v360_v32  ;;  %v322_v37 = vpop.f32.mrf.mxu2 }
  0xaf   :  { %573 = vmatmul.bf16.vlgmr.msra.gmra.mxu0 %v363_v33  ;;  %599 = vmatmul.bf16.vlgmr.msra.gmra.mxu2 %v363_v33  ;;  %v342_v39 = vpop.f32.mrf.mxu3  ;;  %v323_v40 = vadd.f32 %v322_v37, %v225_v22  ;;  %v655_v33 = vperm.slane %v1344_v30, 0 }
  0xb0   :  { %586 = vmatmul.bf16.vlgmr.msra.gmra.mxu1 %v364_v36  ;;  %612 = vmatmul.bf16.vlgmr.msra.gmra.mxu3 %v364_v36  ;;  %v343_v44 = vadd.f32 %v342_v39, %v245_v28 }
  0xb1   :  { %1160 = vmatpush.bf16.msra.mxu2 %v1672_v34  ;;  %1173 = vmatpush.bf16.msra.mxu3 %v1680_v35  ;;  %v357_v47 = vadd.f32 %v349_v41, %v323_v40  ;;  %v656_v40 = vperm.slane %v1344_v30, 1 }
  0xb2   :  { %1038 = vmatpush.bf16.msra.mxu0 %v1688_v38  ;;  %v358_v50 = vadd.f32 %v350_v45, %v343_v44  ;;  %1051 = vmatpush.bf16.msra.mxu1 %v1696_v59 }
  0xb3   :  { %v361_v51 = vmax.f32 %v357_v47, 0.0 }
  0xb4   :  { %v362_v54 = vmax.f32 %v358_v50, 0.0 }
  0xb5   :  { %1161 = vmatpush.bf16.msra.mxu2 %v1671_v42  ;;  %1174 = vmatpush.bf16.msra.mxu3 %v1679_v43  ;;  %v365_v55 = vpack.c.bf16 %v361_v51, %v361_v51 }
  0xb6   :  { %1039 = vmatpush.bf16.msra.mxu0 %v1687_v46  ;;  %v366_v57 = vpack.c.bf16 %v362_v54, %v362_v54  ;;  %1052 = vmatpush.bf16.msra.mxu1 %v1695_v63 }
  0xb9   :  { %1162 = vmatpush.bf16.msra.mxu2 %v1670_v48  ;;  %1175 = vmatpush.bf16.msra.mxu3 %v1678_v49 }
  0xba   :  { %1040 = vmatpush.bf16.msra.mxu0 %v1686_v61  ;;  %1053 = vmatpush.bf16.msra.mxu1 %v1694_v3 }
  0xbd   :  { %1163 = vmatpush.bf16.msra.mxu2 %v1669_v52  ;;  %1176 = vmatpush.bf16.msra.mxu3 %v1677_v53 }
  0xbe   :  { %1041 = vmatpush.bf16.msra.mxu0 %v1685_v1  ;;  %1054 = vmatpush.bf16.msra.mxu1 %v1693_v6 }
  0xbf   :  { %827 = vmatmul.bf16.vlgmr.msrb.gmra.mxu0 %v365_v55  ;;  %853 = vmatmul.bf16.vlgmr.msrb.gmra.mxu2 %v365_v55 }
  0xc0   :  { %840 = vmatmul.bf16.vlgmr.msrb.gmra.mxu1 %v366_v57  ;;  %866 = vmatmul.bf16.vlgmr.msrb.gmra.mxu3 %v366_v57 }
  0xc1   :  { %1164 = vmatpush.bf16.msra.mxu2 %v1668_v56  ;;  %1177 = vmatpush.bf16.msra.mxu3 %v1676_v60 }
  0xc2   :  { %1042 = vmatpush.bf16.msra.mxu0 %v1684_v5  ;;  %1055 = vmatpush.bf16.msra.mxu1 %v1692_v9 }
  0xc5   :  { %1165 = vmatpush.bf16.msra.mxu2 %v1667_v58  ;;  %1178 = vmatpush.bf16.msra.mxu3 %v1675_v0 }
  0xc6   :  { %1043 = vmatpush.bf16.msra.mxu0 %v1683_v8  ;;  %1056 = vmatpush.bf16.msra.mxu1 %v1691_v11 }
  0xc9   :  { %1166 = vmatpush.bf16.msra.mxu2 %v1666_v62  ;;  %1179 = vmatpush.bf16.msra.mxu3 %v1674_v4  ;;  %v1710_v62 = vld [vmem:[%s2007_s8] ss:$0 sm:$0xff] }
  0xca   :  { %1044 = vmatpush.bf16.msra.mxu0 %v1682_v10  ;;  %1057 = vmatpush.bf16.msra.mxu1 %v1690_v13 }
  0xcd   :  { %1167 = vmatpush.bf16.msra.mxu2 %v1665_v2  ;;  %1180 = vmatpush.bf16.msra.mxu3 %v1673_v7 }
  0xce   :  { %1045 = vmatpush.bf16.msra.mxu0 %v1681_v12  ;;  %1058 = vmatpush.bf16.msra.mxu1 %v1689_v15 }
 0x12c   :  { %v574_v17 = vpop.f32.mrf.mxu0 }
 0x12d   :  { %v575_v18 = vadd.f32 %v574_v17, %v401_v16  ;;  %v587_v19 = vpop.f32.mrf.mxu1 }
 0x12f   :  { %v588_v20 = vadd.f32 %v587_v19, %v575_v18 }
 0x131   :  { %v617_v22 = vmax.f32 %v588_v20, 0.0 }
 0x132   :  { %v600_v23 = vpop.f32.mrf.mxu2 }
 0x133   :  { %v873_v24 = vpack.c.bf16 %v617_v22, %v617_v22  ;;  %v601_v25 = vadd.f32 %v600_v23, %v402_v21  ;;  %v613_v26 = vpop.f32.mrf.mxu3 }
 0x134   :  { %v576_v27 = vpop.f32.mrf.mxu0 }
 0x135   :  { %v614_v28 = vadd.f32 %v613_v26, %v601_v25  ;;  %v589_v29 = vpop.f32.mrf.mxu1  ;;  %1168 = vmatmul.bf16.vlgmr.msra.gmra.mxu2 %v873_v24 }
 0x137   :  { %v618_v31 = vmax.f32 %v614_v28, 0.0 }
 0x139   :  { %v874_v32 = vpack.c.bf16 %v618_v31, %v618_v31 }
 0x13a   :  { %v602_v34 = vpop.f32.mrf.mxu2 }
 0x13b   :  { %v615_v35 = vpop.f32.mrf.mxu3  ;;  %1181 = vmatmul.bf16.vlgmr.msra.gmra.mxu3 %v874_v32 }
 0x13c   :  { %v828_v36 = vpop.f32.mrf.mxu0 }
 0x13d   :  { %v829_v37 = vadd.f32 %v828_v36, %v655_v33  ;;  %v841_v38 = vpop.f32.mrf.mxu1 }
 0x13f   :  { %v842_v39 = vadd.f32 %v841_v38, %v829_v37 }
 0x141   :  { %v871_v41 = vmax.f32 %v842_v39, 0.0 }
 0x142   :  { %v854_v42 = vpop.f32.mrf.mxu2 }
 0x143   :  { %v907_v43 = vpack.c.bf16 %v871_v41, %v871_v41  ;;  %v855_v44 = vadd.f32 %v854_v42, %v656_v40  ;;  %v867_v45 = vpop.f32.mrf.mxu3 }
 0x144   :  { %v830_v46 = vpop.f32.mrf.mxu0 }
 0x145   :  { %v868_v47 = vadd.f32 %v867_v45, %v855_v44  ;;  %v843_v48 = vpop.f32.mrf.mxu1  ;;  %1046 = vmatmul.bf16.vlgmr.msra.gmra.mxu0 %v907_v43 }
 0x147   :  { %v872_v49 = vmax.f32 %v868_v47, 0.0 }
 0x149   :  { %v908_v50 = vpack.c.bf16 %v872_v49, %v872_v49 }
 0x14a   :  { %v856_v51 = vpop.f32.mrf.mxu2 }
 0x14b   :  { %v869_v52 = vpop.f32.mrf.mxu3  ;;  %1059 = vmatmul.bf16.vlgmr.msra.gmra.mxu1 %v908_v50 }
 0x1b8   :  { %v1169_v53 = vpop.f32.mrf.mxu2 }
 0x1be   :  { %v1182_v54 = vpop.f32.mrf.mxu3 }
 0x1c0   :  { %v1171_v55 = vpop.f32.mrf.mxu2 }
 0x1c2   :  { %v1047_v56 = vpop.f32.mrf.mxu0 }
 0x1c6   :  { %v1184_v57 = vpop.f32.mrf.mxu3 }
 0x1c8   :  { %v1060_v58 = vpop.f32.mrf.mxu1 }
 0x1c9   :  { %v1061_v59 = vadd.f32 %v1060_v58, %v1047_v56 }
 0x1ca   :  { %v1049_v60 = vpop.f32.mrf.mxu0 }
 0x1cb   :  { %v1170_v61 = vadd.f32 %v1169_v53, %v1061_v59 }
 0x1cd   :  { %v1183_v63 = vadd.f32 %v1182_v54, %v1170_v61 }
 0x1cf   :  { %v1190_v0 = vadd.f32 %v1710_v62, %v1183_v63 }
 0x1d0   :  { %v1062_v1 = vpop.f32.mrf.mxu1 }
 0x1d1   :  { %1191 = vst [vmem:[%s2008_s9] sm:$0xff] %v1190_v0 }
 0x1d2   :  { %1196 = vsyncpa [#allocation3], 1 }
 0x1d3   :  { %1197 = vsyncpa [#allocation5], 1 }
 0x1d4   :  { %1198 = vsyncpa [#allocation8], 1 }
 0x1d5   :  { %1199 = vsyncpa [#allocation11], 1 }

</bundles_post_ra>
